<compile_context>
chip_gen: v7x
topology: tpu7x:2x2x1
jax: 0.10.0
libtpu: 0.0.40
codegen_flags: <defaults>
</compile_context>

<pallas_src>
import jax
import jax.numpy as jnp
from jax import lax
from jax.experimental import pallas as pl
from jax.experimental.pallas import tpu as pltpu


# ----------------------------------------------------------------------------
# Fused bidirectional LSTM layer kernel.  Grid = (direction, time-chunk).
# gx holds the pre-computed input projection (no bias) for both directions, so
# the per-step work is only h @ W_hh^T + gates.
# ----------------------------------------------------------------------------
def _bilstm_layer_kernel(gx_ref, h0_ref, c0_ref, whh_ref, bias_ref,
                         out_ref, hn_ref, h_scr, c_scr):
    d = pl.program_id(0)            # direction: 0 = forward, 1 = backward
    ci = pl.program_id(1)           # time-chunk index (sequential per dir)
    T = gx_ref.shape[1]
    H = h_scr.shape[-1]

    @pl.when(ci == 0)
    def _():
        h_scr[...] = h0_ref[d]
        c_scr[...] = c0_ref[d]

    whh = whh_ref[d]                # (H, 4H) in compute dtype
    bias = bias_ref[d]              # (1, 4H) f32 (b_ih + b_hh) added in-kernel

    # sigmoid via tanh identity: one EUP op per gate, no divides on the
    # recurrence critical path.
    sig = lambda z: 0.5 * jnp.tanh(0.5 * z) + 0.5

    def step(i, carry):
        h, c = carry
        # d=0 walks local indices 0..T-1; d=1 walks T-1..0 (within-chunk
        # reversal; the chunk-level reversal is in the BlockSpec index_map).
        j = i * (1 - 2 * d) + d * (T - 1)
        gates = (gx_ref[0, j].astype(jnp.float32) + bias
                 + jnp.dot(h.astype(whh.dtype), whh,
                           preferred_element_type=jnp.float32))
        # NOTE: at production H (multiple of 128) these slices are lane
        # aligned; at the tiny demo H=32 they are partial-vreg slices.
        i_g = sig(gates[:, 0 * H:1 * H])
        f_g = sig(gates[:, 1 * H:2 * H])
        g_g = jnp.tanh(gates[:, 2 * H:3 * H])
        o_g = sig(gates[:, 3 * H:4 * H])
        c_new = f_g * c + i_g * g_g
        h_new = o_g * jnp.tanh(c_new)
        out_ref[0, j] = h_new.astype(out_ref.dtype)
        return h_new, c_new

    h, c = lax.fori_loop(0, T, step, (h_scr[...], c_scr[...]), unroll=True)
    h_scr[...] = h
    c_scr[...] = c

    @pl.when(ci == pl.num_programs(1) - 1)
    def _():
        hn_ref[0] = h               # final hidden state, written once per dir


def bilstm_layer(gx, h0_pair, c0_pair, whh_pair, bias_pair, *,
                 time_chunk=16, out_dtype=jnp.float32,
                 use_core_parallel=False):
    """One bidirectional LSTM layer.

    gx:        (2, S, B, 4H) hoisted input projection (no bias); dir 0 = fwd.
    h0_pair:   (2, B, H);  c0_pair: (2, B, H)
    whh_pair:  (2, H, 4H) = W_hh^T;  bias_pair: (2, 1, 4H) = b_ih + b_hh
    Returns out (2, S, B, H) in original time order for both directions and
    hn (2, B, H) final hidden states (f32).
    """
    _, S, B, G = gx.shape
    H = h0_pair.shape[-1]
    T = min(time_chunk, S)
    assert S % T == 0, "sequence length must divide the time chunk"
    n_chunks = S // T

    # Chunk-level time reversal for the backward direction lives in the
    # index_map; no HBM flips of the sequence are materialized.
    def tmap(d, c):
        return (d, c * (1 - 2 * d) + d * (n_chunks - 1), 0, 0)

    whole = lambda d, c: (0, 0, 0)   # whole-array const blocks (never re-DMAed)

    # On v7x set use_core_parallel=True so fwd/bwd shard onto the two
    # TensorCores; plain "parallel" is kept as the portable default
    # (single-TensorCore v5e/v6e).
    dim_sem = ((pltpu.CORE_PARALLEL if use_core_parallel else "parallel"),
               "arbitrary")

    out, hn = pl.pallas_call(
        _bilstm_layer_kernel,
        out_shape=(jax.ShapeDtypeStruct((2, S, B, H), out_dtype),
                   jax.ShapeDtypeStruct((2, B, H), jnp.float32)),
        grid_spec=pltpu.PrefetchScalarGridSpec(
            num_scalar_prefetch=0,
            grid=(2, n_chunks),
            in_specs=[
                # If a trace shows exposed gx DMA, add
                # pipeline_mode=pl.Buffered(3) to this spec.
                pl.BlockSpec((1, T, B, G), tmap),
                pl.BlockSpec((2, B, H), whole),
                pl.BlockSpec((2, B, H), whole),
                pl.BlockSpec((2, H, G), whole),
                pl.BlockSpec((2, 1, G), whole),
            ],
            out_specs=[
                pl.BlockSpec((1, T, B, H), tmap),
                pl.BlockSpec((1, B, H), lambda d, c: (d, 0, 0)),
            ],
            scratch_shapes=[pltpu.VMEM((B, H), jnp.float32),
                            pltpu.VMEM((B, H), jnp.float32)]),
        compiler_params=pltpu.CompilerParams(dimension_semantics=dim_sem),
    )(gx, h0_pair, c0_pair, whh_pair, bias_pair)
    return out, hn


# ----------------------------------------------------------------------------
# Attention + classifier head, tiled over the sequence with an online softmax.
# Consumes the raw (2, S, B, H) LSTM output: fwd+bwd add and the batch-major
# view happen in-kernel, so no HBM add/transpose pass in front of the head.
# ----------------------------------------------------------------------------
def _attn_head_kernel(seq_ref, hsum_ref, wa_ref, ba_ref, wl_ref, bl_ref,
                      o_ref, attn_scr, m_scr, l_scr, acc_scr):
    s = pl.program_id(0)

    @pl.when(s == 0)
    def _():
        attn_scr[...] = jnp.maximum(
            jnp.dot(hsum_ref[...], wa_ref[...],
                    preferred_element_type=jnp.float32) + ba_ref[...], 0.0)
        m_scr[...] = jnp.full_like(m_scr[...], -jnp.inf)
        l_scr[...] = jnp.zeros_like(l_scr[...])
        acc_scr[...] = jnp.zeros_like(acc_scr[...])

    # (2, ts, B, H) time-major block: fuse the forward + backward halves here.
    seq = seq_ref[0].astype(jnp.float32) + seq_ref[1].astype(jnp.float32)
    attn = attn_scr[...]                                          # (B, H)

    # scores ctx[t, b] = <attn[b, :], seq[t, b, :]> via broadcast multiply +
    # lane reduce (VPU/XLU) instead of a degenerate M=1 MXU matmul.
    ctx = jnp.sum(attn[None, :, :] * seq, axis=-1, keepdims=True)  # (ts, B, 1)

    m_prev = m_scr[...]                                           # (B, 1)
    m_new = jnp.maximum(m_prev, jnp.max(ctx, axis=0))             # (B, 1)
    alpha = jnp.exp(m_prev - m_new)                               # (B, 1)
    p = jnp.exp(ctx - m_new)                                      # (ts, B, 1)
    l_scr[...] = alpha * l_scr[...] + jnp.sum(p, axis=0)
    acc_scr[...] = alpha * acc_scr[...] + jnp.sum(p * seq, axis=0)
    m_scr[...] = m_new

    @pl.when(s == pl.num_programs(0) - 1)
    def _():
        # exact reciprocal so the softmax normalization matches the reference
        pooled = acc_scr[...] * pl.reciprocal(l_scr[...], approx=False)
        o_ref[...] = (jnp.dot(pooled, wl_ref[...],
                              preferred_element_type=jnp.float32)
                      + bl_ref[...])


def attn_head(hsum, out_dir, wa_t, ba, wl_t, bl, *, seq_tile=64):
    _, S, B, H = out_dir.shape
    C = wl_t.shape[-1]
    ts = min(seq_tile, S)
    assert S % ts == 0, "sequence length must divide the sequence tile"
    n_tiles = S // ts
    return pl.pallas_call(
        _attn_head_kernel,
        out_shape=jax.ShapeDtypeStruct((B, C), jnp.float32),
        grid_spec=pltpu.PrefetchScalarGridSpec(
            num_scalar_prefetch=0,
            grid=(n_tiles,),
            in_specs=[
                pl.BlockSpec((2, ts, B, H), lambda s: (0, s, 0, 0)),
                pl.BlockSpec((B, H), lambda s: (0, 0)),
                pl.BlockSpec((H, H), lambda s: (0, 0)),
                pl.BlockSpec((1, H), lambda s: (0, 0)),
                pl.BlockSpec((H, C), lambda s: (0, 0)),
                pl.BlockSpec((1, C), lambda s: (0, 0)),
            ],
            out_specs=pl.BlockSpec((B, C), lambda s: (0, 0)),
            scratch_shapes=[pltpu.VMEM((B, H), jnp.float32),
                            pltpu.VMEM((B, 1), jnp.float32),
                            pltpu.VMEM((B, 1), jnp.float32),
                            pltpu.VMEM((B, H), jnp.float32)]),
        compiler_params=pltpu.CompilerParams(
            dimension_semantics=("arbitrary",)),
    )(out_dir, hsum, wa_t, ba, wl_t, bl)


# ----------------------------------------------------------------------------
# Full BiLSTMModel forward
# ----------------------------------------------------------------------------
def bilstm_model_forward(x_bse, params, h0, c0, *, compute_dtype=jnp.bfloat16,
                         time_chunk=16, seq_tile=64, use_core_parallel=False):
    """x_bse: (B, S, E) batch-first (the PyTorch forward permutes internally).

    compute_dtype is the storage / MXU-input dtype for the sequence-sized
    tensors (gx, layer outputs) and W_hh; h/c state, gates and accumulators
    stay f32.  bfloat16 is the production setting; float32 matches the f32
    reference exactly.
    """
    x = jnp.transpose(x_bse, (1, 0, 2))                    # (S, B, E)
    hns = []
    out_dir = None
    for l, p in enumerate(params["lstm"]):
        wih_t, whh_t, bias = p["wih_t"], p["whh_t"], p["bias"]
        H = whh_t.shape[1]
        # Hoisted input projection: one big MXU matmul over the whole
        # sequence for both directions; stored in compute_dtype and read
        # exactly once by the recurrence kernel (bias added in-kernel).
        if l == 0:
            gx = jnp.einsum('sbe,deg->dsbg', x.astype(compute_dtype),
                            wih_t.astype(compute_dtype),
                            preferred_element_type=jnp.float32)
        else:
            # Feed the two direction outputs through the matching halves of
            # W_ih^T instead of materializing concat([out_f, out_b]) in HBM.
            wih_r = wih_t.reshape(2, 2, H, 4 * H)          # (dir, half, H, 4H)
            gx = jnp.einsum('xsbh,dxhg->dsbg', out_dir,
                            wih_r.astype(compute_dtype),
                            preferred_element_type=jnp.float32)
        gx = gx.astype(compute_dtype)
        out_dir, hn = bilstm_layer(
            gx, h0[2 * l:2 * l + 2], c0[2 * l:2 * l + 2],
            whh_t.astype(compute_dtype), bias.reshape(2, 1, 4 * H),
            time_chunk=time_chunk, out_dtype=compute_dtype,
            use_core_parallel=use_core_parallel)
        hns.append(hn)

    # h_n summed over every (layer, direction) final state (tiny, plain XLA).
    h_n = jnp.sum(jnp.stack(hns, 0), axis=(0, 1))          # (B, H) f32
    # fwd+bwd add and layout change happen inside the head kernel.
    return attn_head(h_n, out_dir, *params["head"], seq_tile=seq_tile)


# ----------------------------------------------------------------------------
# Pure-JAX reference (for correctness check)
# ----------------------------------------------------------------------------
def reference_forward(x_bse, params, h0, c0):
    sig = lambda z: 1.0 / (1.0 + jnp.exp(-z))

    def run_dir(seq, h, c, wih_t, whh_t, b):
        H = h.shape[-1]
        outs = []
        for t in range(seq.shape[0]):
            g = seq[t] @ wih_t + h @ whh_t + b
            i, f, gg, o = (sig(g[:, :H]), sig(g[:, H:2 * H]),
                           jnp.tanh(g[:, 2 * H:3 * H]), sig(g[:, 3 * H:]))
            c = f * c + i * gg
            h = o * jnp.tanh(c)
            outs.append(h)
        return jnp.stack(outs, 0), h

    layer_in = jnp.transpose(x_bse, (1, 0, 2))
    hns = []
    for l, p in enumerate(params["lstm"]):
        of, hf = run_dir(layer_in, h0[2 * l], c0[2 * l],
                         p["wih_t"][0], p["whh_t"][0], p["bias"][0])
        obr, hb = run_dir(layer_in[::-1], h0[2 * l + 1], c0[2 * l + 1],
                          p["wih_t"][1], p["whh_t"][1], p["bias"][1])
        layer_in = jnp.concatenate([of, obr[::-1]], axis=-1)
        hns += [hf, hb]
    H = hns[0].shape[-1]
    out = jnp.transpose(layer_in[..., :H] + layer_in[..., H:], (1, 0, 2))
    h_n = jnp.sum(jnp.stack(hns, 0), 0)
    wa_t, ba, wl_t, bl = params["head"]
    attn = jnp.maximum(h_n @ wa_t + ba, 0.0)
    ctx = jnp.einsum("bh,bsh->bs", attn, out)
    sm = jax.nn.softmax(ctx, axis=-1)
    pooled = jnp.einsum("bs,bsh->bh", sm, out)
    return pooled @ wl_t + bl


# ----------------------------------------------------------------------------
# Deterministic parameter init (PyTorch-style uniform(-1/sqrt(H), 1/sqrt(H)))
# ----------------------------------------------------------------------------
def init_params(key, E, H, L, C):
    bound = 1.0 / jnp.sqrt(H)

    def u(key, shape):
        return jax.random.uniform(key, shape, jnp.float32, -bound, bound)

    params = {"lstm": []}
    for l in range(L):
        in_dim = E if l == 0 else 2 * H
        key, k1, k2, k3, k4 = jax.random.split(key, 5)
        params["lstm"].append({
            "wih_t": u(k1, (2, in_dim, 4 * H)),      # (dir, E_in, 4H) = W_ih^T
            "whh_t": u(k2, (2, H, 4 * H)),           # (dir, H, 4H)    = W_hh^T
            "bias": u(k3, (2, 4 * H)) + u(k4, (2, 4 * H)),   # b_ih + b_hh
        })

    key, k1, k2, k3, k4 = jax.random.split(key, 5)
    params["head"] = (u(k1, (H, H)), u(k2, (1, H)),   # attention linear
                      u(k3, (H, C)), u(k4, (1, C)))   # classifier linear
    return params


if __name__ == "__main__":
    # Small shapes consistent with the module's forward
    B, S, E, H, L, C = 2, 8, 16, 32, 2, 2

    key = jax.random.PRNGKey(0)
    kx, kh, kc, kp = jax.random.split(key, 4)

    x = jax.random.normal(kx, (B, S, E), jnp.float32)
    # torch.randn initial states inside the PyTorch forward -> deterministic
    # external inputs here.
    h0 = jax.random.normal(kh, (2 * L, B, H), jnp.float32)
    c0 = jax.random.normal(kc, (2 * L, B, H), jnp.float32)
    params = init_params(kp, E, H, L, C)

    ref = reference_forward(x, params, h0, c0)

    # f32 path: tight parity with the pure-JAX reference.  Small chunks/tiles
    # so the chunked recurrence and online-softmax accumulation (multiple
    # grid steps) are actually exercised at these tiny shapes.
    logits_f32 = jax.block_until_ready(
        bilstm_model_forward(x, params, h0, c0, compute_dtype=jnp.float32,
                             time_chunk=4, seq_tile=4))
    assert logits_f32.shape == (B, C)
    assert jnp.allclose(logits_f32, ref, atol=2e-3, rtol=2e-3), (logits_f32, ref)

    # bf16 MXU-input path (production setting): looser tolerance vs the f32
    # reference (f32 accumulation, bf16 matmul inputs / storage).
    logits_bf16 = jax.block_until_ready(
        bilstm_model_forward(x, params, h0, c0, compute_dtype=jnp.bfloat16,
                             time_chunk=4, seq_tile=4))
    assert logits_bf16.shape == (B, C)
    assert bool(jnp.all(jnp.isfinite(logits_bf16)))
    assert float(jnp.max(jnp.abs(logits_bf16 - ref))) < 0.3, (logits_bf16, ref)

    print("KERNEL_OK")
</pallas_src>

<mosaic_0001>
module attributes {stable_mosaic.version = 11 : i64} {
  func.func @_bilstm_layer_kernel(%arg0: i32, %arg1: i32, %arg2: memref<1x4x2x128xf32, #tpu.memory_space<vmem>>, %arg3: memref<2x2x32xf32, #tpu.memory_space<vmem>>, %arg4: memref<2x2x32xf32, #tpu.memory_space<vmem>>, %arg5: memref<2x32x128xf32, #tpu.memory_space<vmem>>, %arg6: memref<2x1x128xf32, #tpu.memory_space<vmem>>, %arg7: memref<1x4x2x32xf32, #tpu.memory_space<vmem>>, %arg8: memref<1x2x32xf32, #tpu.memory_space<vmem>>, %arg9: memref<2x32xf32, #tpu.memory_space<vmem>>, %arg10: memref<2x32xf32, #tpu.memory_space<vmem>>) attributes {dimension_semantics = [#tpu.dimension_semantics<parallel>, #tpu.dimension_semantics<arbitrary>], iteration_bounds = array<i64: 2, 2>, scalar_prefetch = 0 : i64, scratch_operands = 2 : i64, tpu.core_type = #tpu.core_type<tc>, window_params = [{transform_indices = @transform_0, window_bounds = array<i64: 1, 4, 2, 128>}, {pipeline_mode = #tpu.pipeline_mode<synchronous>, transform_indices = @transform_1, window_bounds = array<i64: 2, 2, 32>}, {pipeline_mode = #tpu.pipeline_mode<synchronous>, transform_indices = @transform_2, window_bounds = array<i64: 2, 2, 32>}, {pipeline_mode = #tpu.pipeline_mode<synchronous>, transform_indices = @transform_3, window_bounds = array<i64: 2, 32, 128>}, {pipeline_mode = #tpu.pipeline_mode<synchronous>, transform_indices = @transform_4, window_bounds = array<i64: 2, 1, 128>}, {transform_indices = @transform_5, window_bounds = array<i64: 1, 4, 2, 32>}, {transform_indices = @transform_6, window_bounds = array<i64: 1, 2, 32>}]} {
    %c0_i32 = arith.constant 0 : i32
    %0 = arith.cmpi eq, %arg1, %c0_i32 : i32
    %1 = arith.extui %0 : i1 to i32
    %c0_i32_0 = arith.constant 0 : i32
    %2 = arith.cmpi ne, %1, %c0_i32_0 : i32
    scf.if %2 {
      %204 = arith.index_cast %arg0 : i32 to index
      %c0_90 = arith.constant 0 : index
      %c0_91 = arith.constant 0 : index
      %205 = vector.load %arg3[%204, %c0_90, %c0_91] : memref<2x2x32xf32, #tpu.memory_space<vmem>>, vector<1x2x32xf32>
      %206 = vector.shape_cast %205 : vector<1x2x32xf32> to vector<2x32xf32>
      %c0_92 = arith.constant 0 : index
      %c0_93 = arith.constant 0 : index
      %207 = vector.load %arg9[%c0_92, %c0_93] : memref<2x32xf32, #tpu.memory_space<vmem>>, vector<2x32xf32>
      tpu.vector_store %arg9[%c0_92, %c0_93], %206 {strides = array<i32>} : memref<2x32xf32, #tpu.memory_space<vmem>>, vector<2x32xf32>,
      %208 = arith.index_cast %arg0 : i32 to index
      %c0_94 = arith.constant 0 : index
      %c0_95 = arith.constant 0 : index
      %209 = vector.load %arg4[%208, %c0_94, %c0_95] : memref<2x2x32xf32, #tpu.memory_space<vmem>>, vector<1x2x32xf32>
      %210 = vector.shape_cast %209 : vector<1x2x32xf32> to vector<2x32xf32>
      %c0_96 = arith.constant 0 : index
      %c0_97 = arith.constant 0 : index
      %211 = vector.load %arg10[%c0_96, %c0_97] : memref<2x32xf32, #tpu.memory_space<vmem>>, vector<2x32xf32>
      tpu.vector_store %arg10[%c0_96, %c0_97], %210 {strides = array<i32>} : memref<2x32xf32, #tpu.memory_space<vmem>>, vector<2x32xf32>,
    } else {
    }
    %3 = arith.index_cast %arg0 : i32 to index
    %c0 = arith.constant 0 : index
    %c0_1 = arith.constant 0 : index
    %4 = vector.load %arg5[%3, %c0, %c0_1] : memref<2x32x128xf32, #tpu.memory_space<vmem>>, vector<1x32x128xf32>
    %5 = vector.shape_cast %4 : vector<1x32x128xf32> to vector<32x128xf32>
    %6 = arith.index_cast %arg0 : i32 to index
    %c0_2 = arith.constant 0 : index
    %c0_3 = arith.constant 0 : index
    %7 = vector.load %arg6[%6, %c0_2, %c0_3] : memref<2x1x128xf32, #tpu.memory_space<vmem>>, vector<1x1x128xf32>
    %8 = vector.shape_cast %7 : vector<1x1x128xf32> to vector<1x128xf32>
    %c0_4 = arith.constant 0 : index
    %c0_5 = arith.constant 0 : index
    %9 = vector.load %arg9[%c0_4, %c0_5] : memref<2x32xf32, #tpu.memory_space<vmem>>, vector<2x32xf32>
    %c0_6 = arith.constant 0 : index
    %c0_7 = arith.constant 0 : index
    %10 = vector.load %arg10[%c0_6, %c0_7] : memref<2x32xf32, #tpu.memory_space<vmem>>, vector<2x32xf32>
    %c0_i32_8 = arith.constant 0 : i32
    %c2_i32 = arith.constant 2 : i32
    %11 = arith.muli %c2_i32, %arg0 : i32
    %c1_i32 = arith.constant 1 : i32
    %12 = arith.subi %c1_i32, %11 : i32
    %13 = arith.muli %c0_i32_8, %12 : i32
    %c3_i32 = arith.constant 3 : i32
    %14 = arith.muli %arg0, %c3_i32 : i32
    %15 = arith.addi %13, %14 : i32
    %c0_9 = arith.constant 0 : index
    %16 = arith.index_cast %15 : i32 to index
    %c0_10 = arith.constant 0 : index
    %c0_11 = arith.constant 0 : index
    %17 = vector.load %arg2[%c0_9, %16, %c0_10, %c0_11] : memref<1x4x2x128xf32, #tpu.memory_space<vmem>>, vector<1x1x2x128xf32>
    %18 = vector.shape_cast %17 : vector<1x1x2x128xf32> to vector<2x128xf32>
    %19 = vector.broadcast %8 : vector<1x128xf32> to vector<2x128xf32>
    %20 = arith.addf %18, %19 : vector<2x128xf32>
    %cst = arith.constant dense<0.000000e+00> : vector<2x128xf32>
    %21 = tpu.matmul %9, %5, %cst {dimension_numbers = #tpu.dot_dimension_numbers<[1], [0], [0], [1], [0, 0, 1, 1], [], []>} : vector<2x32xf32>, vector<32x128xf32>, vector<2x128xf32> -> vector<2x128xf32>
    %22 = arith.addf %20, %21 : vector<2x128xf32>
    %23 = vector.extract_strided_slice %22 {offsets = [0, 0], sizes = [2, 32], strides = [1, 1]} : vector<2x128xf32> to vector<2x32xf32>
    %cst_12 = arith.constant 5.000000e-01 : f32
    %24 = vector.broadcast %cst_12 : f32 to vector<2x32xf32>
    %25 = arith.mulf %24, %23 : vector<2x32xf32>
    %26 = math.tanh %25 : vector<2x32xf32>
    %cst_13 = arith.constant 5.000000e-01 : f32
    %27 = vector.broadcast %cst_13 : f32 to vector<2x32xf32>
    %28 = arith.mulf %27, %26 : vector<2x32xf32>
    %cst_14 = arith.constant 5.000000e-01 : f32
    %29 = vector.broadcast %cst_14 : f32 to vector<2x32xf32>
    %30 = arith.addf %28, %29 : vector<2x32xf32>
    %31 = vector.extract_strided_slice %22 {offsets = [0, 32], sizes = [2, 32], strides = [1, 1]} : vector<2x128xf32> to vector<2x32xf32>
    %cst_15 = arith.constant 5.000000e-01 : f32
    %32 = vector.broadcast %cst_15 : f32 to vector<2x32xf32>
    %33 = arith.mulf %32, %31 : vector<2x32xf32>
    %34 = math.tanh %33 : vector<2x32xf32>
    %cst_16 = arith.constant 5.000000e-01 : f32
    %35 = vector.broadcast %cst_16 : f32 to vector<2x32xf32>
    %36 = arith.mulf %35, %34 : vector<2x32xf32>
    %cst_17 = arith.constant 5.000000e-01 : f32
    %37 = vector.broadcast %cst_17 : f32 to vector<2x32xf32>
    %38 = arith.addf %36, %37 : vector<2x32xf32>
    %39 = vector.extract_strided_slice %22 {offsets = [0, 64], sizes = [2, 32], strides = [1, 1]} : vector<2x128xf32> to vector<2x32xf32>
    %40 = math.tanh %39 : vector<2x32xf32>
    %41 = vector.extract_strided_slice %22 {offsets = [0, 96], sizes = [2, 32], strides = [1, 1]} : vector<2x128xf32> to vector<2x32xf32>
    %cst_18 = arith.constant 5.000000e-01 : f32
    %42 = vector.broadcast %cst_18 : f32 to vector<2x32xf32>
    %43 = arith.mulf %42, %41 : vector<2x32xf32>
    %44 = math.tanh %43 : vector<2x32xf32>
    %cst_19 = arith.constant 5.000000e-01 : f32
    %45 = vector.broadcast %cst_19 : f32 to vector<2x32xf32>
    %46 = arith.mulf %45, %44 : vector<2x32xf32>
    %cst_20 = arith.constant 5.000000e-01 : f32
    %47 = vector.broadcast %cst_20 : f32 to vector<2x32xf32>
    %48 = arith.addf %46, %47 : vector<2x32xf32>
    %49 = arith.mulf %38, %10 : vector<2x32xf32>
    %50 = arith.mulf %30, %40 : vector<2x32xf32>
    %51 = arith.addf %49, %50 : vector<2x32xf32>
    %52 = math.tanh %51 : vector<2x32xf32>
    %53 = arith.mulf %48, %52 : vector<2x32xf32>
    %c0_21 = arith.constant 0 : index
    %54 = arith.index_cast %15 : i32 to index
    %c0_22 = arith.constant 0 : index
    %c0_23 = arith.constant 0 : index
    %55 = vector.load %arg7[%c0_21, %54, %c0_22, %c0_23] : memref<1x4x2x32xf32, #tpu.memory_space<vmem>>, vector<1x1x2x32xf32>
    %56 = vector.shape_cast %55 : vector<1x1x2x32xf32> to vector<2x32xf32>
    %57 = vector.shape_cast %53 : vector<2x32xf32> to vector<1x1x2x32xf32>
    tpu.vector_store %arg7[%c0_21, %54, %c0_22, %c0_23], %57 {strides = array<i32>} : memref<1x4x2x32xf32, #tpu.memory_space<vmem>>, vector<1x1x2x32xf32>,
    %c1_i32_24 = arith.constant 1 : i32
    %c2_i32_25 = arith.constant 2 : i32
    %58 = arith.muli %c2_i32_25, %arg0 : i32
    %c1_i32_26 = arith.constant 1 : i32
    %59 = arith.subi %c1_i32_26, %58 : i32
    %60 = arith.muli %c1_i32_24, %59 : i32
    %c3_i32_27 = arith.constant 3 : i32
    %61 = arith.muli %arg0, %c3_i32_27 : i32
    %62 = arith.addi %60, %61 : i32
    %c0_28 = arith.constant 0 : index
    %63 = arith.index_cast %62 : i32 to index
    %c0_29 = arith.constant 0 : index
    %c0_30 = arith.constant 0 : index
    %64 = vector.load %arg2[%c0_28, %63, %c0_29, %c0_30] : memref<1x4x2x128xf32, #tpu.memory_space<vmem>>, vector<1x1x2x128xf32>
    %65 = vector.shape_cast %64 : vector<1x1x2x128xf32> to vector<2x128xf32>
    %66 = vector.broadcast %8 : vector<1x128xf32> to vector<2x128xf32>
    %67 = arith.addf %65, %66 : vector<2x128xf32>
    %cst_31 = arith.constant dense<0.000000e+00> : vector<2x128xf32>
    %68 = tpu.matmul %53, %5, %cst_31 {dimension_numbers = #tpu.dot_dimension_numbers<[1], [0], [0], [1], [0, 0, 1, 1], [], []>} : vector<2x32xf32>, vector<32x128xf32>, vector<2x128xf32> -> vector<2x128xf32>
    %69 = arith.addf %67, %68 : vector<2x128xf32>
    %70 = vector.extract_strided_slice %69 {offsets = [0, 0], sizes = [2, 32], strides = [1, 1]} : vector<2x128xf32> to vector<2x32xf32>
    %cst_32 = arith.constant 5.000000e-01 : f32
    %71 = vector.broadcast %cst_32 : f32 to vector<2x32xf32>
    %72 = arith.mulf %71, %70 : vector<2x32xf32>
    %73 = math.tanh %72 : vector<2x32xf32>
    %cst_33 = arith.constant 5.000000e-01 : f32
    %74 = vector.broadcast %cst_33 : f32 to vector<2x32xf32>
    %75 = arith.mulf %74, %73 : vector<2x32xf32>
    %cst_34 = arith.constant 5.000000e-01 : f32
    %76 = vector.broadcast %cst_34 : f32 to vector<2x32xf32>
    %77 = arith.addf %75, %76 : vector<2x32xf32>
    %78 = vector.extract_strided_slice %69 {offsets = [0, 32], sizes = [2, 32], strides = [1, 1]} : vector<2x128xf32> to vector<2x32xf32>
    %cst_35 = arith.constant 5.000000e-01 : f32
    %79 = vector.broadcast %cst_35 : f32 to vector<2x32xf32>
    %80 = arith.mulf %79, %78 : vector<2x32xf32>
    %81 = math.tanh %80 : vector<2x32xf32>
    %cst_36 = arith.constant 5.000000e-01 : f32
    %82 = vector.broadcast %cst_36 : f32 to vector<2x32xf32>
    %83 = arith.mulf %82, %81 : vector<2x32xf32>
    %cst_37 = arith.constant 5.000000e-01 : f32
    %84 = vector.broadcast %cst_37 : f32 to vector<2x32xf32>
    %85 = arith.addf %83, %84 : vector<2x32xf32>
    %86 = vector.extract_strided_slice %69 {offsets = [0, 64], sizes = [2, 32], strides = [1, 1]} : vector<2x128xf32> to vector<2x32xf32>
    %87 = math.tanh %86 : vector<2x32xf32>
    %88 = vector.extract_strided_slice %69 {offsets = [0, 96], sizes = [2, 32], strides = [1, 1]} : vector<2x128xf32> to vector<2x32xf32>
    %cst_38 = arith.constant 5.000000e-01 : f32
    %89 = vector.broadcast %cst_38 : f32 to vector<2x32xf32>
    %90 = arith.mulf %89, %88 : vector<2x32xf32>
    %91 = math.tanh %90 : vector<2x32xf32>
    %cst_39 = arith.constant 5.000000e-01 : f32
    %92 = vector.broadcast %cst_39 : f32 to vector<2x32xf32>
    %93 = arith.mulf %92, %91 : vector<2x32xf32>
    %cst_40 = arith.constant 5.000000e-01 : f32
    %94 = vector.broadcast %cst_40 : f32 to vector<2x32xf32>
    %95 = arith.addf %93, %94 : vector<2x32xf32>
    %96 = arith.mulf %85, %51 : vector<2x32xf32>
    %97 = arith.mulf %77, %87 : vector<2x32xf32>
    %98 = arith.addf %96, %97 : vector<2x32xf32>
    %99 = math.tanh %98 : vector<2x32xf32>
    %100 = arith.mulf %95, %99 : vector<2x32xf32>
    %c0_41 = arith.constant 0 : index
    %101 = arith.index_cast %62 : i32 to index
    %c0_42 = arith.constant 0 : index
    %c0_43 = arith.constant 0 : index
    %102 = vector.load %arg7[%c0_41, %101, %c0_42, %c0_43] : memref<1x4x2x32xf32, #tpu.memory_space<vmem>>, vector<1x1x2x32xf32>
    %103 = vector.shape_cast %102 : vector<1x1x2x32xf32> to vector<2x32xf32>
    %104 = vector.shape_cast %100 : vector<2x32xf32> to vector<1x1x2x32xf32>
    tpu.vector_store %arg7[%c0_41, %101, %c0_42, %c0_43], %104 {strides = array<i32>} : memref<1x4x2x32xf32, #tpu.memory_space<vmem>>, vector<1x1x2x32xf32>,
    %c2_i32_44 = arith.constant 2 : i32
    %c2_i32_45 = arith.constant 2 : i32
    %105 = arith.muli %c2_i32_45, %arg0 : i32
    %c1_i32_46 = arith.constant 1 : i32
    %106 = arith.subi %c1_i32_46, %105 : i32
    %107 = arith.muli %c2_i32_44, %106 : i32
    %c3_i32_47 = arith.constant 3 : i32
    %108 = arith.muli %arg0, %c3_i32_47 : i32
    %109 = arith.addi %107, %108 : i32
    %c0_48 = arith.constant 0 : index
    %110 = arith.index_cast %109 : i32 to index
    %c0_49 = arith.constant 0 : index
    %c0_50 = arith.constant 0 : index
    %111 = vector.load %arg2[%c0_48, %110, %c0_49, %c0_50] : memref<1x4x2x128xf32, #tpu.memory_space<vmem>>, vector<1x1x2x128xf32>
    %112 = vector.shape_cast %111 : vector<1x1x2x128xf32> to vector<2x128xf32>
    %113 = vector.broadcast %8 : vector<1x128xf32> to vector<2x128xf32>
    %114 = arith.addf %112, %113 : vector<2x128xf32>
    %cst_51 = arith.constant dense<0.000000e+00> : vector<2x128xf32>
    %115 = tpu.matmul %100, %5, %cst_51 {dimension_numbers = #tpu.dot_dimension_numbers<[1], [0], [0], [1], [0, 0, 1, 1], [], []>} : vector<2x32xf32>, vector<32x128xf32>, vector<2x128xf32> -> vector<2x128xf32>
    %116 = arith.addf %114, %115 : vector<2x128xf32>
    %117 = vector.extract_strided_slice %116 {offsets = [0, 0], sizes = [2, 32], strides = [1, 1]} : vector<2x128xf32> to vector<2x32xf32>
    %cst_52 = arith.constant 5.000000e-01 : f32
    %118 = vector.broadcast %cst_52 : f32 to vector<2x32xf32>
    %119 = arith.mulf %118, %117 : vector<2x32xf32>
    %120 = math.tanh %119 : vector<2x32xf32>
    %cst_53 = arith.constant 5.000000e-01 : f32
    %121 = vector.broadcast %cst_53 : f32 to vector<2x32xf32>
    %122 = arith.mulf %121, %120 : vector<2x32xf32>
    %cst_54 = arith.constant 5.000000e-01 : f32
    %123 = vector.broadcast %cst_54 : f32 to vector<2x32xf32>
    %124 = arith.addf %122, %123 : vector<2x32xf32>
    %125 = vector.extract_strided_slice %116 {offsets = [0, 32], sizes = [2, 32], strides = [1, 1]} : vector<2x128xf32> to vector<2x32xf32>
    %cst_55 = arith.constant 5.000000e-01 : f32
    %126 = vector.broadcast %cst_55 : f32 to vector<2x32xf32>
    %127 = arith.mulf %126, %125 : vector<2x32xf32>
    %128 = math.tanh %127 : vector<2x32xf32>
    %cst_56 = arith.constant 5.000000e-01 : f32
    %129 = vector.broadcast %cst_56 : f32 to vector<2x32xf32>
    %130 = arith.mulf %129, %128 : vector<2x32xf32>
    %cst_57 = arith.constant 5.000000e-01 : f32
    %131 = vector.broadcast %cst_57 : f32 to vector<2x32xf32>
    %132 = arith.addf %130, %131 : vector<2x32xf32>
    %133 = vector.extract_strided_slice %116 {offsets = [0, 64], sizes = [2, 32], strides = [1, 1]} : vector<2x128xf32> to vector<2x32xf32>
    %134 = math.tanh %133 : vector<2x32xf32>
    %135 = vector.extract_strided_slice %116 {offsets = [0, 96], sizes = [2, 32], strides = [1, 1]} : vector<2x128xf32> to vector<2x32xf32>
    %cst_58 = arith.constant 5.000000e-01 : f32
    %136 = vector.broadcast %cst_58 : f32 to vector<2x32xf32>
    %137 = arith.mulf %136, %135 : vector<2x32xf32>
    %138 = math.tanh %137 : vector<2x32xf32>
    %cst_59 = arith.constant 5.000000e-01 : f32
    %139 = vector.broadcast %cst_59 : f32 to vector<2x32xf32>
    %140 = arith.mulf %139, %138 : vector<2x32xf32>
    %cst_60 = arith.constant 5.000000e-01 : f32
    %141 = vector.broadcast %cst_60 : f32 to vector<2x32xf32>
    %142 = arith.addf %140, %141 : vector<2x32xf32>
    %143 = arith.mulf %132, %98 : vector<2x32xf32>
    %144 = arith.mulf %124, %134 : vector<2x32xf32>
    %145 = arith.addf %143, %144 : vector<2x32xf32>
    %146 = math.tanh %145 : vector<2x32xf32>
    %147 = arith.mulf %142, %146 : vector<2x32xf32>
    %c0_61 = arith.constant 0 : index
    %148 = arith.index_cast %109 : i32 to index
    %c0_62 = arith.constant 0 : index
    %c0_63 = arith.constant 0 : index
    %149 = vector.load %arg7[%c0_61, %148, %c0_62, %c0_63] : memref<1x4x2x32xf32, #tpu.memory_space<vmem>>, vector<1x1x2x32xf32>
    %150 = vector.shape_cast %149 : vector<1x1x2x32xf32> to vector<2x32xf32>
    %151 = vector.shape_cast %147 : vector<2x32xf32> to vector<1x1x2x32xf32>
    tpu.vector_store %arg7[%c0_61, %148, %c0_62, %c0_63], %151 {strides = array<i32>} : memref<1x4x2x32xf32, #tpu.memory_space<vmem>>, vector<1x1x2x32xf32>,
    %c3_i32_64 = arith.constant 3 : i32
    %c2_i32_65 = arith.constant 2 : i32
    %152 = arith.muli %c2_i32_65, %arg0 : i32
    %c1_i32_66 = arith.constant 1 : i32
    %153 = arith.subi %c1_i32_66, %152 : i32
    %154 = arith.muli %c3_i32_64, %153 : i32
    %c3_i32_67 = arith.constant 3 : i32
    %155 = arith.muli %arg0, %c3_i32_67 : i32
    %156 = arith.addi %154, %155 : i32
    %c0_68 = arith.constant 0 : index
    %157 = arith.index_cast %156 : i32 to index
    %c0_69 = arith.constant 0 : index
    %c0_70 = arith.constant 0 : index
    %158 = vector.load %arg2[%c0_68, %157, %c0_69, %c0_70] : memref<1x4x2x128xf32, #tpu.memory_space<vmem>>, vector<1x1x2x128xf32>
    %159 = vector.shape_cast %158 : vector<1x1x2x128xf32> to vector<2x128xf32>
    %160 = vector.broadcast %8 : vector<1x128xf32> to vector<2x128xf32>
    %161 = arith.addf %159, %160 : vector<2x128xf32>
    %cst_71 = arith.constant dense<0.000000e+00> : vector<2x128xf32>
    %162 = tpu.matmul %147, %5, %cst_71 {dimension_numbers = #tpu.dot_dimension_numbers<[1], [0], [0], [1], [0, 0, 1, 1], [], []>} : vector<2x32xf32>, vector<32x128xf32>, vector<2x128xf32> -> vector<2x128xf32>
    %163 = arith.addf %161, %162 : vector<2x128xf32>
    %164 = vector.extract_strided_slice %163 {offsets = [0, 0], sizes = [2, 32], strides = [1, 1]} : vector<2x128xf32> to vector<2x32xf32>
    %cst_72 = arith.constant 5.000000e-01 : f32
    %165 = vector.broadcast %cst_72 : f32 to vector<2x32xf32>
    %166 = arith.mulf %165, %164 : vector<2x32xf32>
    %167 = math.tanh %166 : vector<2x32xf32>
    %cst_73 = arith.constant 5.000000e-01 : f32
    %168 = vector.broadcast %cst_73 : f32 to vector<2x32xf32>
    %169 = arith.mulf %168, %167 : vector<2x32xf32>
    %cst_74 = arith.constant 5.000000e-01 : f32
    %170 = vector.broadcast %cst_74 : f32 to vector<2x32xf32>
    %171 = arith.addf %169, %170 : vector<2x32xf32>
    %172 = vector.extract_strided_slice %163 {offsets = [0, 32], sizes = [2, 32], strides = [1, 1]} : vector<2x128xf32> to vector<2x32xf32>
    %cst_75 = arith.constant 5.000000e-01 : f32
    %173 = vector.broadcast %cst_75 : f32 to vector<2x32xf32>
    %174 = arith.mulf %173, %172 : vector<2x32xf32>
    %175 = math.tanh %174 : vector<2x32xf32>
    %cst_76 = arith.constant 5.000000e-01 : f32
    %176 = vector.broadcast %cst_76 : f32 to vector<2x32xf32>
    %177 = arith.mulf %176, %175 : vector<2x32xf32>
    %cst_77 = arith.constant 5.000000e-01 : f32
    %178 = vector.broadcast %cst_77 : f32 to vector<2x32xf32>
    %179 = arith.addf %177, %178 : vector<2x32xf32>
    %180 = vector.extract_strided_slice %163 {offsets = [0, 64], sizes = [2, 32], strides = [1, 1]} : vector<2x128xf32> to vector<2x32xf32>
    %181 = math.tanh %180 : vector<2x32xf32>
    %182 = vector.extract_strided_slice %163 {offsets = [0, 96], sizes = [2, 32], strides = [1, 1]} : vector<2x128xf32> to vector<2x32xf32>
    %cst_78 = arith.constant 5.000000e-01 : f32
    %183 = vector.broadcast %cst_78 : f32 to vector<2x32xf32>
    %184 = arith.mulf %183, %182 : vector<2x32xf32>
    %185 = math.tanh %184 : vector<2x32xf32>
    %cst_79 = arith.constant 5.000000e-01 : f32
    %186 = vector.broadcast %cst_79 : f32 to vector<2x32xf32>
    %187 = arith.mulf %186, %185 : vector<2x32xf32>
    %cst_80 = arith.constant 5.000000e-01 : f32
    %188 = vector.broadcast %cst_80 : f32 to vector<2x32xf32>
    %189 = arith.addf %187, %188 : vector<2x32xf32>
    %190 = arith.mulf %179, %145 : vector<2x32xf32>
    %191 = arith.mulf %171, %181 : vector<2x32xf32>
    %192 = arith.addf %190, %191 : vector<2x32xf32>
    %193 = math.tanh %192 : vector<2x32xf32>
    %194 = arith.mulf %189, %193 : vector<2x32xf32>
    %c0_81 = arith.constant 0 : index
    %195 = arith.index_cast %156 : i32 to index
    %c0_82 = arith.constant 0 : index
    %c0_83 = arith.constant 0 : index
    %196 = vector.load %arg7[%c0_81, %195, %c0_82, %c0_83] : memref<1x4x2x32xf32, #tpu.memory_space<vmem>>, vector<1x1x2x32xf32>
    %197 = vector.shape_cast %196 : vector<1x1x2x32xf32> to vector<2x32xf32>
    %198 = vector.shape_cast %194 : vector<2x32xf32> to vector<1x1x2x32xf32>
    tpu.vector_store %arg7[%c0_81, %195, %c0_82, %c0_83], %198 {strides = array<i32>} : memref<1x4x2x32xf32, #tpu.memory_space<vmem>>, vector<1x1x2x32xf32>,
    %c4_i32 = arith.constant 4 : i32
    %c0_84 = arith.constant 0 : index
    %c0_85 = arith.constant 0 : index
    %199 = vector.load %arg9[%c0_84, %c0_85] : memref<2x32xf32, #tpu.memory_space<vmem>>, vector<2x32xf32>
    tpu.vector_store %arg9[%c0_84, %c0_85], %194 {strides = array<i32>} : memref<2x32xf32, #tpu.memory_space<vmem>>, vector<2x32xf32>,
    %c0_86 = arith.constant 0 : index
    %c0_87 = arith.constant 0 : index
    %200 = vector.load %arg10[%c0_86, %c0_87] : memref<2x32xf32, #tpu.memory_space<vmem>>, vector<2x32xf32>
    tpu.vector_store %arg10[%c0_86, %c0_87], %192 {strides = array<i32>} : memref<2x32xf32, #tpu.memory_space<vmem>>, vector<2x32xf32>,
    %c1_i32_88 = arith.constant 1 : i32
    %201 = arith.cmpi eq, %arg1, %c1_i32_88 : i32
    %202 = arith.extui %201 : i1 to i32
    %c0_i32_89 = arith.constant 0 : i32
    %203 = arith.cmpi ne, %202, %c0_i32_89 : i32
    scf.if %203 {
      %c0_90 = arith.constant 0 : index
      %c0_91 = arith.constant 0 : index
      %c0_92 = arith.constant 0 : index
      %204 = vector.load %arg8[%c0_90, %c0_91, %c0_92] : memref<1x2x32xf32, #tpu.memory_space<vmem>>, vector<1x2x32xf32>
      %205 = vector.shape_cast %204 : vector<1x2x32xf32> to vector<2x32xf32>
      %206 = vector.shape_cast %194 : vector<2x32xf32> to vector<1x2x32xf32>
      tpu.vector_store %arg8[%c0_90, %c0_91, %c0_92], %206 {strides = array<i32>} : memref<1x2x32xf32, #tpu.memory_space<vmem>>, vector<1x2x32xf32>,
    } else {
    }
    return
  }
  func.func @transform_0(%arg0: i32, %arg1: i32) -> (i32, i32, i32, i32) {
    %c2_i32 = arith.constant 2 : i32
    %0 = arith.muli %c2_i32, %arg0 : i32
    %c1_i32 = arith.constant 1 : i32
    %1 = arith.subi %c1_i32, %0 : i32
    %2 = arith.muli %arg1, %1 : i32
    %c1_i32_0 = arith.constant 1 : i32
    %3 = arith.muli %arg0, %c1_i32_0 : i32
    %4 = arith.addi %2, %3 : i32
    %c0_i32 = arith.constant 0 : i32
    %c0_i32_1 = arith.constant 0 : i32
    %c0_i32_2 = arith.constant 0 : i32
    return %arg0, %4, %c0_i32, %c0_i32_1 : i32, i32, i32, i32
  }
  func.func @transform_1(%arg0: i32, %arg1: i32) -> (i32, i32, i32) {
    %c0_i32 = arith.constant 0 : i32
    %c0_i32_0 = arith.constant 0 : i32
    %c0_i32_1 = arith.constant 0 : i32
    %c0_i32_2 = arith.constant 0 : i32
    return %c0_i32, %c0_i32_0, %c0_i32_1 : i32, i32, i32
  }
  func.func @transform_2(%arg0: i32, %arg1: i32) -> (i32, i32, i32) {
    %c0_i32 = arith.constant 0 : i32
    %c0_i32_0 = arith.constant 0 : i32
    %c0_i32_1 = arith.constant 0 : i32
    %c0_i32_2 = arith.constant 0 : i32
    return %c0_i32, %c0_i32_0, %c0_i32_1 : i32, i32, i32
  }
  func.func @transform_3(%arg0: i32, %arg1: i32) -> (i32, i32, i32) {
    %c0_i32 = arith.constant 0 : i32
    %c0_i32_0 = arith.constant 0 : i32
    %c0_i32_1 = arith.constant 0 : i32
    %c0_i32_2 = arith.constant 0 : i32
    return %c0_i32, %c0_i32_0, %c0_i32_1 : i32, i32, i32
  }
  func.func @transform_4(%arg0: i32, %arg1: i32) -> (i32, i32, i32) {
    %c0_i32 = arith.constant 0 : i32
    %c0_i32_0 = arith.constant 0 : i32
    %c0_i32_1 = arith.constant 0 : i32
    %c0_i32_2 = arith.constant 0 : i32
    return %c0_i32, %c0_i32_0, %c0_i32_1 : i32, i32, i32
  }
  func.func @transform_5(%arg0: i32, %arg1: i32) -> (i32, i32, i32, i32) {
    %c2_i32 = arith.constant 2 : i32
    %0 = arith.muli %c2_i32, %arg0 : i32
    %c1_i32 = arith.constant 1 : i32
    %1 = arith.subi %c1_i32, %0 : i32
    %2 = arith.muli %arg1, %1 : i32
    %c1_i32_0 = arith.constant 1 : i32
    %3 = arith.muli %arg0, %c1_i32_0 : i32
    %4 = arith.addi %2, %3 : i32
    %c0_i32 = arith.constant 0 : i32
    %c0_i32_1 = arith.constant 0 : i32
    %c0_i32_2 = arith.constant 0 : i32
    return %arg0, %4, %c0_i32, %c0_i32_1 : i32, i32, i32, i32
  }
  func.func @transform_6(%arg0: i32, %arg1: i32) -> (i32, i32, i32) {
    %c0_i32 = arith.constant 0 : i32
    %c0_i32_0 = arith.constant 0 : i32
    %c0_i32_1 = arith.constant 0 : i32
    return %arg0, %c0_i32, %c0_i32_0 : i32, i32, i32
  }
}

</mosaic_0001>

<bundles_post_ra>
// kernel: tpu_custom_call.1
= control target key start
LH: loop header
LB: loop body
LE: loop exit
PB: predicated region body
PF: predicated region fallthrough
CT: control target
= control target key end

     0   :  { %s2125_s0 = inlined_call_operand.hbm [shape: f32[2,8,2,128], index: 0, kind: input, shape index: {}]   ;;  %s2126_s1 = inlined_call_operand.hbm [shape: f32[2,2,32], index: 1, kind: input, shape index: {}]   ;;  %s2127_s2 = inlined_call_operand.vmem [shape: f32[2,2,32], index: 2, kind: input, shape index: {}]   ;;  %s2128_s3 = inlined_call_operand.hbm [shape: f32[2,32,128], index: 3, kind: input, shape index: {}]   ;;  %s2129_s4 = inlined_call_operand.vmem [shape: f32[2,1,128], index: 4, kind: input, shape index: {}]   ;;  %s2130_s5 = inlined_call_operand.hbm [shape: f32[2,8,2,32], index: 5, kind: output, shape index: {0}]   ;;  %s2131_s6 = inlined_call_operand.hbm [shape: f32[2,2,32], index: 6, kind: output, shape index: {1}]  }
   0x1   :  { %2158 = sst [smem:[#allocation28_spill]] %s2125_s0 }
   0x2   :  { %2159 = sst [smem:[#allocation29_spill]] %s2126_s1 }
   0x3   :  { %2160 = sst [smem:[#allocation30_spill]] %s2127_s2 }
   0x4   :  { %2161 = sst [smem:[#allocation31_spill]] %s2128_s3 }
   0x5   :  { %2162 = sst [smem:[#allocation32_spill]] %s2129_s4 }
   0x6   :  { %2163 = sst [smem:[#allocation33_spill]] %s2130_s5 }
   0x7   :  { %2164 = sst [smem:[#allocation34_spill]] %s2131_s6 }
   0x8   :  { %12 = vsyncpa [#allocation5], 0 }
   0x9   :  { %14 = vsyncpa [#allocation5 + $0x1], 0 }
   0xa   :  { %15 = vsyncpa [#allocation8], 0 }
   0xb   :  { %16 = vsyncpa [#allocation6], 0 }
   0xc   :  { %18 = vsyncpa [#allocation6 + $0x1], 0 }
   0xd   :  { %19 = vsyncpa [#allocation12], 0 }
   0xe   :  { %21 = vsyncpa [#allocation12 + $0x1], 0  ;;  %s1645_s21 = smov 0   ;;  %s1647_s22 = smov 0  }
   0xf   :  { %s1649_s23 = smov 0   ;;  %s1651_s24 = smov 0  }
  0x10   :  { %s1653_s25 = smov 0   ;;  %s1655_s26 = smov 0  }
  0x11   :  { %s1657_s27 = smov 0   ;;  %s1659_s28 = smov 0  }
  0x12   :  { %s1661_s29 = smov 0   ;;  %s1663_s30 = smov 0  }
  0x13   :  { %s1665_s7 = smov 0  }
  0x14 LB: > { %2165 = sst [smem:[#allocation17_spill]] %s1552_s21  ;;  %s1052_s8 = sadd.s32 4294967295, %s1592_s7   ;;  %s1592_s7 = sphi %s1665_s7, %s27_s7   ;;  %s1588_s30 = sphi %s1663_s30, %s2228_s30   ;;  %s1584_s29 = sphi %s1661_s29, %s2221_s29   ;;  %s1580_s28 = sphi %s1659_s28, %s2227_s28   ;;  %s1576_s27 = sphi %s1657_s27, %s2220_s27   ;;  %s1572_s26 = sphi %s1655_s26, %s2226_s26   ;;  %s1568_s25 = sphi %s1653_s25, %s2225_s25   ;;  %s1564_s24 = sphi %s1651_s24, %s2224_s24   ;;  %s1560_s23 = sphi %s1649_s23, %s2223_s23   ;;  %s1556_s22 = sphi %s1647_s22, %s2222_s22   ;;  %s1552_s21 = sphi %s1645_s21, %s2219_s21  }
  0x15   : > { %2166 = sst [smem:[#allocation18_spill]] %s1556_s22  ;;  %s1053_s9 = sadd.s32 4294967294, %s1592_s7  }
  0x16   : > { %2167 = sst [smem:[#allocation19_spill]] %s1564_s24  ;;  %p69_p0 = scmp.ne.s32.totalorder %s1568_s25, %s1564_s24 }
  0x17   : > { %2168 = sst [smem:[#allocation20_spill]] %s1576_s27  ;;  %p1704_p1 = scmp.eq.s32.totalorder %s1052_s8, 0 }
  0x18   : > { %2169 = sst [smem:[#allocation21_spill]] %s1580_s28  ;;  %p1708_p2 = scmp.eq.s32.totalorder %s1052_s8, 3 }
  0x19   : > { %2170 = sst [smem:[#allocation22_spill]] %s1584_s29  ;;  %p193_p3 = scmp.eq.s32.totalorder %s1053_s9, 3 }
  0x1a   : > { %s2171_s10 = scalar_select %p1704_p1, 1, 0 }
  0x1b   : > { %s2172_s11 = scalar_select %p1708_p2, 1, 0 }
  0x1c   : > { %p1714_p4 = por %p1704_p1, %p69_p0  ;;  %p212_p5 = scmp.ne.s32.totalorder %s1560_s23, %s1556_s22 }
  0x1d   : > { %p1720_p6 = por %p193_p3, %p69_p0  ;;  %p218_p7 = scmp.ne.s32.totalorder %s1556_s22, %s1552_s21 }
  0x1e   : > { %s2173_s12 = scalar_select %p1714_p4, 1, 0 }
  0x1f   : > { %s2174_s13 = scalar_select %p1720_p6, 1, 0 }
  0x20   : > { %p1728_p8 = por %p212_p5, %p1708_p2  ;;  %p1058_p9 = scmp.ge.s32.totalorder %s1592_s7, 1 }
  0x21   : > { %2175 = sst [smem:[#allocation23_spill]] %s2174_s13  ;;  %p1733_p10 = por %p218_p7, %p193_p3 }
  0x22   : > { %s2176_s14 = scalar_select %p1728_p8, 1, 0 }
  0x23   : > { %s2178_s15 = scalar_select %p1733_p10, 1, 0 }
  0x24   : > { %2177 = sst [smem:[#allocation24_spill]] %s2176_s14  ;;  %p226_p11 = scmp.lt.s32.totalorder %s1592_s7, 5 }
  0x25   : > { %2179 = sst [smem:[#allocation25_spill]] %s2178_s15  ;;  %s1594_s17 = smov [#allocation7]  }
  0x26   : > { %p1738_p12 = pnand %p1058_p9, %p226_p11  ;;  %s238_s18 = sshll.u32 %s1594_s17, 4  ;;  %s239_s18 = int_to_ptr.vmem [resolvable:$true] %s238_s18 }
  0x27   : > { %s1595_s20 = smov [#allocation9]   ;;  %s2182_s1 = sld [smem:[#allocation29_spill]] }
  0x28   : > { %s2180_s16 = scalar_select %p1738_p12, 1, 0 }
  0x29   : > { %p1199_p13 = pneg %p1738_p12  ;;  %s254_s8 = sshll.u32 %s1595_s20, 4  ;;  %s1750_s8 = int_to_ptr.vmem [resolvable:$true] %s254_s8 }
  0x2b   : > { %p1746_p0 = pnand %p1199_p13, %p1704_p1 }
  0x2d   : > { %s1348_s21 = scalar_lea.hbm %s2182_s1, 64  ;;  %p1350_p5 = pneg %p1746_p0 }
  0x2e   : > { %p1349_p3 = scmp.ne.s32.totalorder %s2182_s1, %s1348_s21  ;;  %p1355_p11 = scmp.lt.u32.totalorder %s1348_s21, %s2182_s1 }
  0x30   : > { %p1351_p7 = pnand %p1350_p5, %p1349_p3 }
  0x32   : > { %p1352_p9 = pneg %p1351_p7 }
  0x34   : > { %p1357_p13 = pnand %p1355_p11, %p1352_p9 }
  0x36   : > { %1360 = shalt.err (!%p1357_p13)
}
  0x37   : > { %s1361_s20 = scalar_lea.vmem %s239_s18, 64  ;;  %p1369_p1 = scmp.lt.s32.totalorder %s239_s18, %s239_s18 }
  0x38   : > { %p1362_p10 = scmp.ne.s32.totalorder %s239_s18, %s1361_s20  ;;  %p1370_p4 = scmp.lt.s32.totalorder %s1361_s20, %s1361_s20 }
  0x3a   : > { %p1364_p6 = pnand %p1362_p10, %p1350_p5  ;;  %p1371_p12 = por %p1370_p4, %p1369_p1 }
  0x3c   : > { %p1365_p8 = pneg %p1364_p6 }
  0x3e   : > { %p1372_p2 = pnand %p1371_p12, %p1365_p8 }
  0x40   : > { %1375 = shalt.err (!%p1372_p2)
}
  0x41   : > { %s2146_s13 = smov 32   ;;  %s2147_s15 = smov 2  }
  0x42   : > { %1202 = dma.hbm_to_vmem [thread:$0]  (!%p1746_p0), %s2182_s1, 64, %s239_s18, [#allocation8], %s2146_s13, %s2146_s13, %s2147_s15  }
  0x43   : > { %s2183_s3 = sld [smem:[#allocation31_spill]] }
  0x49   : > { %s1376_s17 = scalar_lea.hbm %s2183_s3, 1024 }
  0x4a   : > { %p1377_p1 = scmp.ne.s32.totalorder %s2183_s3, %s1376_s17  ;;  %p1383_p6 = scmp.lt.u32.totalorder %s1376_s17, %s2183_s3 }
  0x4c   : > { %p1379_p2 = pnand %p1377_p1, %p1350_p5 }
  0x4e   : > { %p1380_p4 = pneg %p1379_p2 }
  0x50   : > { %p1385_p8 = pnand %p1383_p6, %p1380_p4 }
  0x52   : > { %1388 = shalt.err (!%p1385_p8)
}
  0x53   : > { %s1389_s18 = scalar_lea.vmem %s1750_s8, 1024  ;;  %p1397_p7 = scmp.lt.s32.totalorder %s1750_s8, %s1750_s8 }
  0x54   : > { %p1390_p10 = scmp.ne.s32.totalorder %s1750_s8, %s1389_s18  ;;  %p1398_p9 = scmp.lt.s32.totalorder %s1389_s18, %s1389_s18 }
  0x56   : > { %p1392_p12 = pnand %p1390_p10, %p1350_p5  ;;  %p1399_p11 = por %p1398_p9, %p1397_p7 }
  0x58   : > { %p1393_p3 = pneg %p1392_p12 }
  0x5a   : > { %p1400_p13 = pnand %p1399_p11, %p1393_p3 }
  0x5c   : > { %1403 = shalt.err (!%p1400_p13)
}
  0x5d   : > { %s1598_s4 = smov 128   ;;  %s1599_s5 = smov 8  }
  0x5e   : > { %1205 = dma.hbm_to_vmem [thread:$0]  (!%p1746_p0), %s2183_s3, 1024, %s1750_s8, [#allocation8], %s1598_s4, %s1598_s4, %s1599_s5  }
  0x5f   : > { %s36_s24 = sadd.s32 1, %s1584_s29  ;;  %s39_s14 = sadd.s32 1, %s1588_s30 }
  0x60   : > { %p37_p5 = scmp.ge.s32.totalorder %s36_s24, 2  ;;  %s1054_s9 = sshll.u32 %s1588_s30, 1 }
  0x61   : > { %s44_s17 = ssub.s32 1, %s1054_s9  ;;  %s56_s20 = sadd.s32 1, %s1572_s26 }
  0x62   : > { %s2230_s24 = smov (%p37_p5, %s36_s24), 0  ;;  %s2232_s14 = smov (!%p37_p5, %s39_s14), %s1588_s30 }
  0x63   : > { %2184 = sst [smem:[#allocation26_spill]] %s2230_s24  ;;  %s45_s18 = smul.u32 %s1584_s29, %s44_s17 }
  0x64   : > { %p63_p1 = scmp.ne.s32.totalorder %s1572_s26, %s1568_s25  ;;  %p41_p2 = scmp.ge.s32.totalorder %s2232_s14, 2 }
  0x65   : > { %p64_p4 = scmp.eq.s32.totalorder %s1592_s7, 0  ;;  %s46_s19 = sadd.s32 %s1588_s30, %s45_s18 }
  0x66   : > { %p2185_p0 = scmp.ne.s32.totalorder %s2172_s11, 0  ;;  %s2234_s14 = smov (%p41_p2, %s2232_s14), 0 }
  0x67   : > { %p1822_p8 = por %p64_p4, %p63_p1  ;;  %s202_s5 = sadd.s32 1, %s1560_s23 }
  0x68   : > { %p1816_p6 = por %p2185_p0, %p63_p1  ;;  %s1055_s6 = sshll.u32 %s2234_s14, 1 }
  0x69   : > { %s51_s21 = ssub.s32 %s1588_s30, %s2234_s14  ;;  %s48_s9 = ssub.s32 1, %s1055_s6 }
  0x6a   : > { %s2186_s8 = scalar_select %p1816_p6, 1, 0 }
  0x6b   : > { %p200_p10 = scmp.eq.s32.totalorder %s51_s21, 0  ;;  %s49_s11 = smul.u32 %s48_s9, %s2230_s24 }
  0x6c   : > { %2187 = sst [smem:[#allocation27_spill]] %s2186_s8  ;;  %p1219_p12 = scmp.lt.s32.totalorder %s1592_s7, 4 }
  0x6d   : > { %s1833_s17 = scalar_select %p200_p10, %s1560_s23, %s202_s5  }
  0x6e   : > { %s50_s18 = sadd.s32 %s49_s11, %s2234_s14  ;;  %s271_s13 = sand.u32 1, %s1572_s26  }
  0x6f   : > { %s52_s15 = ssub.s32 %s46_s19, %s50_s18  ;;  %s1062_s3 = sshll.u32 %s271_s13, 3 }
  0x70   : > { %s53_s1 = sor.u32 %s52_s15, %s51_s21  ;;  %s1064_s29 = sshll.u32 %s46_s19, 2 }
  0x71   : > { %p54_p3 = scmp.eq.s32.totalorder %s53_s1, 0  ;;  %s1065_s8 = sshll.u32 %s1588_s30, 3 }
  0x72   : > { %s285_s28 = sadd.s32 %s1065_s8, %s1064_s29  ;;  %s275_s27 = scalar_lea.vmem [#allocation4], %s1062_s3 }
  0x73   : > { %s1839_s2 = scalar_select %p54_p3, %s1572_s26, %s56_s20  }
  0x74   : > { %s288_s6 = sshll.u32 %s275_s27, 4  ;;  %s1066_s22 = sshll.u32 %s285_s28, 5  ;;  %s1841_s6 = int_to_ptr.vmem [resolvable:$true] %s288_s6 }
  0x75   : > { %s2189_s0 = sld [smem:[#allocation28_spill]]  ;;  %p1852_p7 = pnand %p1219_p12, %p1822_p8 }
  0x76   : > { %s1856_s3 = scalar_lea.sflag [#allocation5], %s271_s13 }
  0x77   : > { %p1406_p11 = pneg %p1852_p7 }
  0x7b   : > { %s1846_s24 = scalar_lea.hbm %s2189_s0, %s1066_s22  ;;  %s1409_s29 = scalar_lea.hbm %s2189_s0, 512 }
  0x7c   : > { %s1404_s27 = scalar_lea.hbm %s1846_s24, 128  ;;  %p1410_p1 = scmp.lt.u32.totalorder %s1846_s24, %s2189_s0 }
  0x7d   : > { %p1405_p9 = scmp.ne.s32.totalorder %s1846_s24, %s1404_s27  ;;  %p1411_p2 = scmp.lt.u32.totalorder %s1409_s29, %s1404_s27 }
  0x7e   : > { %p1413_p0 = scmp.lt.u32.totalorder %s1404_s27, %s1846_s24 }
  0x7f   : > { %p1407_p13 = pnand %p1406_p11, %p1405_p9  ;;  %p1412_p4 = por %p1411_p2, %p1410_p1 }
  0x81   : > { %p1408_p5 = pneg %p1407_p13  ;;  %p1414_p8 = por %p1413_p0, %p1412_p4 }
  0x83   : > { %p1415_p10 = pnand %p1414_p8, %p1408_p5 }
  0x85   : > { %1418 = shalt.err (!%p1415_p10)
}
  0x86   : > { %s1419_s13 = scalar_lea.vmem %s1841_s6, 128  ;;  %s1600_s19 = smov [#allocation4]  }
  0x87   : > { %p1420_p12 = scmp.ne.s32.totalorder %s1841_s6, %s1419_s13  ;;  %s1424_s8 = sshll.u32 %s1600_s19, 4  ;;  %s1425_s8 = int_to_ptr.vmem [resolvable:$false] %s1424_s8 }
  0x88   : > { %s1426_s4 = scalar_lea.vmem %s1425_s8, 256  ;;  %p1427_p13 = scmp.lt.s32.totalorder %s1841_s6, %s1425_s8 }
  0x89   : > { %p1422_p3 = pnand %p1420_p12, %p1406_p11  ;;  %p1428_p1 = scmp.lt.s32.totalorder %s1426_s4, %s1419_s13 }
  0x8b   : > { %p1423_p9 = pneg %p1422_p3  ;;  %p1429_p2 = por %p1428_p1, %p1427_p13 }
  0x8d   : > { %p1430_p4 = pnand %p1429_p2, %p1423_p9 }
  0x8f   : > { %1433 = shalt.err (!%p1430_p4)
}
  0x90   : > { %s2191_s21 = smov 2   ;;  %s2192_s11 = smov 32  }
  0x91   : > { %1209 = dma.hbm_to_vmem [thread:$0]  (!%p1852_p7), %s1846_s24, 128, %s1841_s6, %s1856_s3, %s2192_s11, %s2192_s11, %s2191_s21  }
  0x92   : > { %p2193_p11 = scmp.ne.s32.totalorder %s2180_s16, 0 }
  0x93   : > { %s1890_s18 = sand.u32 (!%p2193_p11), 1, %s1568_s25   ;;  %p2194_p5 = scmp.ne.s32.totalorder (!%p2193_p11), %s2173_s12, 0 }
  0x94   : > { %300 = sbr.rel (%p2193_p11) target bundleno = 3066 (0xbfa), region = 40  ;;  %s1068_s5 = sshll.u32 (!%p2193_p11), %s1890_s18, 3 }
  0x95   : > { %s303_s9 = scalar_lea.sflag (!%p2193_p11), [#allocation5], %s1890_s18  ;;  %s1894_s27 = scalar_lea.vmem (!%p2193_p11), [#allocation4], %s1068_s5 }
  0x9b   : > { %1535 = dma.done.wait (%p2194_p5), %s303_s9, 128  }
  0x9c   : > { %1537 = vsyncadd (%p2194_p5), %s303_s9, 4294967168  ;;  %p2195_p7 = scmp.ne.s32.totalorder %s2171_s10, 0 }
  0x9e   : > { %1539 = dma.done.wait (%p2195_p7), [#allocation8], 1088  }
  0x9f   : > { %1541 = vsyncadd (%p2195_p7), [#allocation8], 4294966208  ;;  %s2196_s16 = sld [smem:[#allocation18_spill]]  ;;  %s1909_s1 = scalar_lea.vmem [#allocation10], %s1068_s5 }
  0xa0   : > { %s2197_s22 = sld [smem:[#allocation20_spill]] }
  0xa5   : > { %s2156_s24 = sand.u32 1, %s2196_s16  }
  0xa6   : > { %s1907_s6 = sshll.u32 %s2156_s24, 1  ;;  %p1073_p0 = scmp.ne.s32.totalorder %s2197_s22, 0 }
  0xa7   : > { %s347_s3 = scalar_lea.vmem [#allocation11], %s1907_s6  ;;  %s2198_s12 = sld [smem:[#allocation21_spill]] (!%p1073_p0)  ;;  %vm365_vm0 = vcmask (!%p1073_p0), 254976  }
  0xa8   : > { %361 = sbr.rel (%p1073_p0) target bundleno = 178 (0xb2), region = 56  ;;  %s2199_s10 = sld [smem:[#allocation30_spill]] (!%p1073_p0) }
  0xad   : > { %s1074_s28 = sshll.u32 (!%p1073_p0), %s2198_s12, 1 }
  0xae   : > { %s367_s20 = scalar_lea.vmem (!%p1073_p0), %s2199_s10, %s1074_s28  ;;  %s363_s13 = scalar_lea.vmem (!%p1073_p0), [#allocation7], %s1074_s28 }
  0xaf   : > { %v364_v0 = vld [vmem:[%s363_s13] sm:$0x3] }
  0xb0   : > { %v368_v1 = vld [vmem:[%s367_s20] sm:$0x3]  ;;  %366 = vst.msk [vmem:[#allocation2] sm:$0x3] %vm365_vm0, %v364_v0 }
  0xb1   : > { %369 = vst.msk [vmem:[#allocation3] sm:$0x3] %vm365_vm0, %v368_v1 }
  0xb2 PF: > { %s2200_s19 = sld [smem:[#allocation21_spill]]  ;;  %v1601_v2 = vmov 0.0|0.0   ;;  %vm1602_vm1 = vmmov 0   ;;  %v1603_v3 = vmov 0.0   ;;  %vm391_vm2 = vcmask 261120   ;;  %s2201_s9 = sld [smem:[#allocation32_spill]] }
  0xb3   : > { %1161 = vmatprep.subr.bf16.mxu0 %v1601_v2  ;;  %1125 = vmatprep.mubr.msk.f32.mxu0 %vm1602_vm1, %v1603_v3  ;;  %s1604_s12 = smov 64   ;;  %s2157_s28 = smov 32   ;;  %vm497_vm3 = vcmask 254976  }
  0xb4   : > { %1167 = vmatprep.subr.bf16.mxu1 %v1601_v2  ;;  %1136 = vmatprep.mubr.msk.f32.mxu1 %vm1602_vm1, %v1603_v3 }
  0xb7   : > { %v378_v10 = vld [vmem:[#allocation2] sm:$0x3] }
  0xb8   : > { %s1075_s8 = sshll.u32 %s2200_s19, 5  ;;  %s1076_s21 = smul.u32 6, %s2200_s19  ;;  %v379_v18 = vld [vmem:[#allocation3] sm:$0x3] }
  0xb9   : > { %s371_s4 = scalar_lea.vmem [#allocation9], %s1075_s8  ;;  %s376_s16 = scalar_lea.vmem %s2201_s9, %s2200_s19 }
  0xba   : > { %v372_v4 = vld [vmem:[%s371_s4] sm:$0xff]  ;;  %v373_v5 = vld [vmem:[%s371_s4 + $0x8] sm:$0xff]  ;;  %v374_v6 = vld [vmem:[%s371_s4 + $0x10] sm:$0xff]  ;;  %s382_s22 = scalar_lea.vmem %s1894_s27, %s1076_s21 [#allocation4]  ;;  %s496_s29 = scalar_lea.vmem %s1909_s1, %s1076_s21 [#allocation10] }
  0xbb   : > { %v1162_v7 = vpack.c.bf16 %v373_v5, %v372_v4  ;;  %v375_v8 = vld [vmem:[%s371_s4 + $0x18] sm:$0xff]  ;;  %v1942_v11 = vld [vmem:[%s376_s16] ss:$0 sm:$0xff]  ;;  %s1079_s15 = sshll.u32 %s2200_s19, 1  ;;  %s1960_s10 = smul.u32 3, %s2200_s19 }
  0xbc   : > { %v1165_v9 = vpack.c.bf16 %v375_v8, %v374_v6  ;;  %v383_v12 = vld [vmem:[%s382_s22] sm:$0x3]  ;;  %s1962_s20 = ssub.s32 1, %s1079_s15 }
  0xbd   : > { %1163 = vmatpush3.bf16.msra.mxu0 %v1162_v7  ;;  %1169 = vmatpush3.bf16.msra.mxu1 %v1162_v7  ;;  %v390_v13 = vadd.f32 %v1942_v11, %v383_v12  ;;  %s501_s13 = sadd.s32 %s1962_s20, %s1960_s10  ;;  %s1082_s11 = sshll.u32 %s1962_s20, 1 }
  0xbe   : > { %1164 = vmatprep.subr.bf16.mxu0 %v1601_v2  ;;  %1170 = vmatprep.subr.bf16.mxu1 %v1601_v2  ;;  %s1966_s4 = sshll.u32 %s501_s13, 1  ;;  %s1981_s5 = sadd.s32 %s1082_s11, %s1960_s10 }
  0xbf   : > { %s503_s21 = scalar_lea.vmem %s1894_s27, %s1966_s4 [#allocation4]  ;;  %s605_s19 = scalar_lea.vmem %s1909_s1, %s1966_s4 [#allocation10] }
  0xc0   : > { %v504_v33 = vld [vmem:[%s503_s21] sm:$0x3]  ;;  %s1083_s9 = sshll.u32 %s1981_s5, 1  ;;  %s2202_s21 = sld [smem:[#allocation20_spill]] }
  0xc1   : > { %1166 = vmatpush3.bf16.msra.mxu0 %v1165_v9  ;;  %1172 = vmatpush3.bf16.msra.mxu1 %v1165_v9  ;;  %v505_v34 = vadd.f32 %v1942_v11, %v504_v33  ;;  %s610_s16 = scalar_lea.vmem %s1894_s27, %s1083_s9 [#allocation4]  ;;  %s712_s22 = scalar_lea.vmem %s1909_s1, %s1083_s9 [#allocation10] }
  0xc2   : > { %1173 = vmatprep.subr.bf16.mxu0 %v1601_v2  ;;  %1179 = vmatprep.subr.bf16.mxu1 %v1601_v2  ;;  %v611_v52 = vld [vmem:[%s610_s16] sm:$0x3] }
  0xc3   : > { %v612_v53 = vadd.f32 %v1942_v11, %v611_v52 }
  0xc4   : > { %1126 = vmatmul.mubr.msk.f32.vlgmr.msra.gmra.mrb[0].mxu0 %vm391_vm2, %v378_v10 }
  0xc5   : > { %1175 = vmatpush3.bf16.msra.mxu0 %v1162_v7  ;;  %1147 = vmatprep.mubr.msk.f32.mxu0 %vm1602_vm1, %v1603_v3 }
  0xc6   : > { %1176 = vmatprep.subr.bf16.mxu0 %v1601_v2  ;;  %p1087_p8 = scmp.ne.s32.totalorder %s2202_s21, 1 }
  0xc9   : > { %1178 = vmatpush3.bf16.msra.mxu0 %v1165_v9 }
 0x197   : > { %v461_v14 = vpop.f32.mrb[0].mxu0 }
 0x198   : > { %v465_v15 = vadd.f32 %v461_v14, %v390_v13  ;;  %v1127_v16 = vpop.f32.mrb[1].mxu0 }
 0x19a   : > { %1324 = vtanh.f32 %v465_v15  ;;  %v466_v19 = vmul.f32 0.5, %v465_v15 }
 0x19c   : > { %1326 = vtanh.f32 %v466_v19 }
 0x1a4   : > { %v1325_v17 = vpop.eup %1324 }
 0x1a5   : > { %477 = vrot.lane.b32.xlu0 %v1325_v17, %s1604_s12 }
 0x1a6   : > { %v1327_v20 = vpop.eup %1326 }
 0x1a7   : > { %v468_v21 = vmul.f32 0.5, %v1327_v20 }
 0x1a9   : > { %472 = vrot.lane.b32.xlu0 %v379_v18, %s2157_s28  ;;  %v469_v22 = vadd.f32 0.5, %v468_v21 }
 0x217   : > { %v478_v23 = vpop.permute.xlu0 %477 }
 0x218   : > { %v480_v24 = vmul.f32 %v478_v23, %v469_v22 }
 0x21a   : > { %482 = vrot.lane.b32.xlu1 %v480_v24, %s2157_s28 }
 0x21b   : > { %v473_v25 = vpop.permute.xlu0 %472 }
 0x21c   : > { %v475_v26 = vmul.f32 %v473_v25, %v469_v22 }
 0x28c   : > { %v483_v27 = vpop.permute.xlu1 %482 }
 0x28d   : > { %v485_v28 = vadd.f32 %v483_v27, %v475_v26 }
 0x28f   : > { %1328 = vtanh.f32 %v485_v28 }
 0x299   : > { %v1329_v29 = vpop.eup %1328 }
 0x29a   : > { %488 = vrot.lane.b32.xlu1 %v1329_v29, %s1604_s12 }
 0x30c   : > { %v489_v30 = vpop.permute.xlu1 %488 }
 0x30d   : > { %v491_v31 = vmul.f32 %v489_v30, %v469_v22 }
 0x30f   : > { %493 = vrot.lane.b32.xlu0 %v491_v31, %s2157_s28 }
 0x381   : > { %v494_v32 = vpop.permute.xlu0 %493 }
 0x382   : > { %498 = vst.msk [vmem:[%s496_s29] sm:$0x3] %vm497_vm3, %v494_v32  ;;  %1137 = vmatmul.mubr.msk.f32.vlgmr.msra.gmra.mrb[0].mxu1 %vm391_vm2, %v494_v32  ;;  %s714_s29 = smul.u32 3, %s1962_s20 }
 0x383   : > { %1181 = vmatpush3.bf16.msra.mxu1 %v1162_v7  ;;  %1158 = vmatprep.mubr.msk.f32.mxu1 %vm1602_vm1, %v1603_v3 }
 0x384   : > { %1182 = vmatprep.subr.bf16.mxu1 %v1601_v2  ;;  %s1995_s15 = sadd.s32 %s714_s29, %s1960_s10 }
 0x385   : > { %s1085_s13 = sshll.u32 %s1995_s15, 1 }
 0x386   : > { %s717_s4 = scalar_lea.vmem %s1894_s27, %s1085_s13 [#allocation4]  ;;  %s1606_s27 = smov 96  }
 0x387   : > { %1184 = vmatpush3.bf16.msra.mxu1 %v1165_v9  ;;  %v718_v7 = vld [vmem:[%s717_s4] sm:$0x3]  ;;  %s819_s10 = scalar_lea.vmem %s1909_s1, %s1085_s13 [#allocation10] }
 0x388   : > { %v719_v8 = vadd.f32 %v1942_v11, %v718_v7 }
 0x455   : > { %v574_v35 = vpop.f32.mrb[0].mxu1 }
 0x456   : > { %v578_v36 = vadd.f32 %v574_v35, %v505_v34  ;;  %v1138_v37 = vpop.f32.mrb[1].mxu1 }
 0x458   : > { %1330 = vtanh.f32 %v578_v36  ;;  %v579_v39 = vmul.f32 0.5, %v578_v36 }
 0x45a   : > { %1332 = vtanh.f32 %v579_v39 }
 0x462   : > { %v1331_v38 = vpop.eup %1330 }
 0x463   : > { %586 = vrot.lane.b32.xlu1 %v1331_v38, %s1604_s12 }
 0x464   : > { %v1333_v40 = vpop.eup %1332 }
 0x465   : > { %v581_v41 = vmul.f32 0.5, %v1333_v40 }
 0x467   : > { %v582_v42 = vadd.f32 0.5, %v581_v41 }
 0x469   : > { %v584_v45 = vmul.f32 %v582_v42, %v485_v28 }
 0x4d5   : > { %v587_v43 = vpop.permute.xlu1 %586 }
 0x4d6   : > { %v589_v44 = vmul.f32 %v587_v43, %v582_v42 }
 0x4d8   : > { %591 = vrot.lane.b32.xlu0 %v589_v44, %s2157_s28 }
 0x54a   : > { %v592_v46 = vpop.permute.xlu0 %591 }
 0x54b   : > { %v594_v47 = vadd.f32 %v592_v46, %v584_v45 }
 0x54d   : > { %1334 = vtanh.f32 %v594_v47 }
 0x557   : > { %v1335_v48 = vpop.eup %1334 }
 0x558   : > { %597 = vrot.lane.b32.xlu1 %v1335_v48, %s1604_s12 }
 0x5ca   : > { %v598_v49 = vpop.permute.xlu1 %597 }
 0x5cb   : > { %v600_v50 = vmul.f32 %v598_v49, %v582_v42 }
 0x5cd   : > { %602 = vrot.lane.b32.xlu0 %v600_v50, %s2157_s28 }
 0x63f   : > { %v603_v51 = vpop.permute.xlu0 %602 }
 0x640   : > { %606 = vst.msk [vmem:[%s605_s19] sm:$0x3] %vm497_vm3, %v603_v51  ;;  %1148 = vmatmul.mubr.msk.f32.vlgmr.msra.gmra.mrb[2].mxu0 %vm391_vm2, %v603_v51 }
 0x713   : > { %v681_v54 = vpop.f32.mrb[2].mxu0 }
 0x714   : > { %v685_v55 = vadd.f32 %v681_v54, %v612_v53  ;;  %v1149_v56 = vpop.f32.mrb[3].mxu0 }
 0x716   : > { %1336 = vtanh.f32 %v685_v55  ;;  %v686_v58 = vmul.f32 0.5, %v685_v55 }
 0x718   : > { %1338 = vtanh.f32 %v686_v58 }
 0x720   : > { %v1337_v57 = vpop.eup %1336 }
 0x721   : > { %693 = vrot.lane.b32.xlu1 %v1337_v57, %s1604_s12 }
 0x722   : > { %v1339_v59 = vpop.eup %1338 }
 0x723   : > { %v688_v60 = vmul.f32 0.5, %v1339_v59 }
 0x725   : > { %v689_v61 = vadd.f32 0.5, %v688_v60 }
 0x727   : > { %v691_v0 = vmul.f32 %v689_v61, %v594_v47 }
 0x793   : > { %v694_v62 = vpop.permute.xlu1 %693 }
 0x794   : > { %v696_v63 = vmul.f32 %v694_v62, %v689_v61 }
 0x796   : > { %698 = vrot.lane.b32.xlu0 %v696_v63, %s2157_s28 }
 0x808   : > { %v699_v1 = vpop.permute.xlu0 %698 }
 0x809   : > { %v701_v2 = vadd.f32 %v699_v1, %v691_v0 }
 0x80b   : > { %1340 = vtanh.f32 %v701_v2 }
 0x815   : > { %v1341_v3 = vpop.eup %1340 }
 0x816   : > { %704 = vrot.lane.b32.xlu1 %v1341_v3, %s1604_s12 }
 0x888   : > { %v705_v4 = vpop.permute.xlu1 %704 }
 0x889   : > { %v707_v5 = vmul.f32 %v705_v4, %v689_v61 }
 0x88b   : > { %709 = vrot.lane.b32.xlu0 %v707_v5, %s2157_s28 }
 0x8fd   : > { %v710_v6 = vpop.permute.xlu0 %709 }
 0x8fe   : > { %713 = vst.msk [vmem:[%s712_s22] sm:$0x3] %vm497_vm3, %v710_v6  ;;  %1159 = vmatmul.mubr.msk.f32.vlgmr.msra.gmra.mrb[2].mxu1 %vm391_vm2, %v710_v6 }
 0x9d1   : > { %v788_v9 = vpop.f32.mrb[2].mxu1 }
 0x9d2   : > { %v792_v10 = vadd.f32 %v788_v9, %v719_v8  ;;  %v1160_v12 = vpop.f32.mrb[3].mxu1 }
 0x9d4   : > { %1342 = vtanh.f32 %v792_v10  ;;  %v793_v14 = vmul.f32 0.5, %v792_v10 }
 0x9d6   : > { %1344 = vtanh.f32 %v793_v14 }
 0x9de   : > { %v1343_v13 = vpop.eup %1342 }
 0x9df   : > { %800 = vrot.lane.b32.xlu1 %v1343_v13, %s1604_s12 }
 0x9e0   : > { %v1345_v15 = vpop.eup %1344 }
 0x9e1   : > { %v795_v16 = vmul.f32 0.5, %v1345_v15 }
 0x9e3   : > { %v796_v17 = vadd.f32 0.5, %v795_v16 }
 0x9e5   : > { %v798_v20 = vmul.f32 %v796_v17, %v701_v2 }
 0xa51   : > { %v801_v18 = vpop.permute.xlu1 %800 }
 0xa52   : > { %v803_v19 = vmul.f32 %v801_v18, %v796_v17 }
 0xa54   : > { %805 = vrot.lane.b32.xlu0 %v803_v19, %s2157_s28 }
 0xac6   : > { %v806_v11 = vpop.permute.xlu0 %805 }
 0xac7   : > { %v808_v21 = vadd.f32 %v806_v11, %v798_v20 }
 0xac9   : > { %1346 = vtanh.f32 %v808_v21 }
 0xad3   : > { %v1347_v22 = vpop.eup %1346 }
 0xad4   : > { %811 = vrot.lane.b32.xlu1 %v1347_v22, %s1604_s12 }
 0xad8   : > { %823 = vrot.lane.b32.xlu1 %v808_v21, %s1606_s27 }
 0xb46   : > { %v812_v23 = vpop.permute.xlu1 %811 }
 0xb47   : > { %v814_v24 = vmul.f32 %v812_v23, %v796_v17 }
 0xb49   : > { %816 = vrot.lane.b32.xlu0 %v814_v24, %s2157_s28 }
 0xb4a   : > { %v824_v25 = vpop.permute.xlu1 %823 }
 0xb4b   : > { %826 = vst.msk [vmem:[#allocation3] sm:$0x3] %vm497_vm3, %v824_v25 }
 0xbb6   : > { %830 = sbr.rel (%p1087_p8) target bundleno = 3006 (0xbbe), region = 60 }
 0xbbb   : > { %v817_v26 = vpop.permute.xlu0 %816 }
 0xbbc   : > { %820 = vst.msk [vmem:[%s819_s10] sm:$0x3] %vm497_vm3, %v817_v26  ;;  %821 = vst.msk [vmem:[#allocation2] sm:$0x3] %vm497_vm3, %v817_v26 }
 0xbbd   : > { %831 = vst.msk [vmem:[%s347_s3] sm:$0x3] %vm497_vm3, %v817_v26 }
 0xbbe PF: > { %s2203_s12 = sld [smem:[#allocation20_spill]]  ;;  %s2204_s19 = sld [smem:[#allocation21_spill]] }
 0xbbf   : > { %s857_s16 = sshll.u32 %s1909_s1, 4  ;;  %s2206_s10 = sld [smem:[#allocation34_spill]]  ;;  %s2021_s16 = int_to_ptr.vmem [resolvable:$true] %s857_s16 }
 0xbc0   : > { %s2037_s1 = sshll.u32 %s347_s3, 4  ;;  %s1434_s0 = scalar_lea.vmem %s2021_s16, 128  ;;  %s874_s1 = int_to_ptr.vmem [resolvable:$true] %s2037_s1 }
 0xbc1   : > { %p1435_p10 = scmp.ne.s32.totalorder %s2021_s16, %s1434_s0 }
 0xbc3   : > { %p1436_p12 = pnand %p1435_p10, %p1816_p6 }
 0xbc4   : > { %s847_s5 = smul.u32 %s2203_s12, %s1962_s20  ;;  %s1092_s9 = sshll.u32 %s2204_s19, 3 }
 0xbc5   : > { %s2028_s21 = scalar_lea.hbm %s2206_s10, %s1075_s8  ;;  %s2207_s20 = sld [smem:[#allocation33_spill]] }
 0xbc6   : > { %s848_s22 = sadd.s32 %s2204_s19, %s847_s5  ;;  %s833_s5 = scalar_lea.sflag [#allocation6], %s1890_s18 }
 0xbc7   : > { %s1091_s29 = sshll.u32 %s848_s22, 2  ;;  %p1437_p3 = pneg %p1436_p12 }
 0xbc8   : > { %s854_s15 = sadd.s32 %s1092_s9, %s1091_s29  ;;  %s1607_s19 = smov [#allocation10]  }
 0xbc9   : > { %s1093_s13 = sshll.u32 %s854_s15, 5  ;;  %s1438_s9 = sshll.u32 %s1607_s19, 4  ;;  %s1439_s9 = int_to_ptr.vmem [resolvable:$false] %s1438_s9 }
 0xbca   : > { %s1440_s22 = scalar_lea.vmem %s1439_s9, 256  ;;  %p1441_p9 = scmp.lt.s32.totalorder %s2021_s16, %s1439_s9 }
 0xbcb   : > { %s2033_s12 = scalar_lea.hbm %s2207_s20, %s1093_s13  ;;  %p1442_p13 = scmp.lt.s32.totalorder %s1440_s22, %s1434_s0 }
 0xbcd   : > { %p1443_p1 = por %p1442_p13, %p1441_p9 }
 0xbcf   : > { %p1444_p2 = pnand %p1443_p1, %p1437_p3 }
 0xbd1   : > { %1447 = shalt.err (!%p1444_p2)
}
 0xbd2   : > { %s1448_s24 = scalar_lea.hbm %s2033_s12, 128  ;;  %s1452_s8 = scalar_lea.hbm %s2207_s20, 512 }
 0xbd3   : > { %p1449_p4 = scmp.ne.s32.totalorder %s2033_s12, %s1448_s24  ;;  %p1453_p7 = scmp.lt.u32.totalorder %s2033_s12, %s2207_s20 }
 0xbd4   : > { %p1454_p0 = scmp.lt.u32.totalorder %s1452_s8, %s1448_s24  ;;  %p1456_p10 = scmp.lt.u32.totalorder %s1448_s24, %s2033_s12 }
 0xbd5   : > { %p1450_p11 = pnand %p1449_p4, %p1816_p6 }
 0xbd6   : > { %p1455_p8 = por %p1454_p0, %p1453_p7 }
 0xbd7   : > { %p1451_p5 = pneg %p1450_p11 }
 0xbd8   : > { %p1457_p12 = por %p1456_p10, %p1455_p8 }
 0xbda   : > { %p1458_p3 = pnand %p1457_p12, %p1451_p5 }
 0xbdc   : > { %1461 = shalt.err (!%p1458_p3)
}
 0xbdd   : > { %s1608_s0 = smov 2   ;;  %s2208_s15 = smov 32  }
 0xbde   : > { %s2209_s13 = sld [smem:[#allocation18_spill]]  ;;  %s1462_s9 = scalar_lea.vmem %s874_s1, 32 }
 0xbdf   : > { %s2210_s4 = sld [smem:[#allocation24_spill]]  ;;  %p1463_p9 = scmp.ne.s32.totalorder %s874_s1, %s1462_s9 }
 0xbe0   : > { %1195 = dma.vmem_to_hbm [thread:$0]  (%p1816_p6), %s2021_s16, 128, %s2033_s12, %s833_s5, %s2208_s15, %s2208_s15, %s1608_s0  }
 0xbe1   : > { %s1609_s22 = smov [#allocation11]  }
 0xbe2   : > { %s1466_s11 = sshll.u32 %s1609_s22, 4  ;;  %s1467_s11 = int_to_ptr.vmem [resolvable:$false] %s1466_s11 }
 0xbe3   : > { %s1468_s24 = scalar_lea.vmem %s1467_s11, 64  ;;  %p1469_p4 = scmp.lt.s32.totalorder %s874_s1, %s1467_s11 }
 0xbe4   : > { %s2211_s27 = sand.u32 1, %s2209_s13   ;;  %p1470_p11 = scmp.lt.s32.totalorder %s1468_s24, %s1462_s9 }
 0xbe5   : > { %s838_s19 = scalar_lea.sflag [#allocation12], %s2211_s27  ;;  %p2212_p13 = scmp.ne.s32.totalorder %s2210_s4, 0 }
 0xbe6   : > { %p1471_p5 = por %p1470_p11, %p1469_p4 }
 0xbe7   : > { %p1464_p1 = pnand %p1463_p9, %p2212_p13 }
 0xbe9   : > { %p1465_p2 = pneg %p1464_p1 }
 0xbeb   : > { %p1472_p7 = pnand %p1471_p5, %p1465_p2 }
 0xbed   : > { %1475 = shalt.err (!%p1472_p7)
}
 0xbee   : > { %s1476_s18 = scalar_lea.hbm %s2028_s21, 32  ;;  %s1480_s5 = scalar_lea.hbm %s2206_s10, 64 }
 0xbef   : > { %p1477_p6 = scmp.ne.s32.totalorder %s2028_s21, %s1476_s18  ;;  %p1481_p10 = scmp.lt.u32.totalorder %s2028_s21, %s2206_s10 }
 0xbf0   : > { %p1482_p12 = scmp.lt.u32.totalorder %s1480_s5, %s1476_s18  ;;  %p1484_p9 = scmp.lt.u32.totalorder %s1476_s18, %s2028_s21 }
 0xbf1   : > { %p1478_p0 = pnand %p1477_p6, %p2212_p13 }
 0xbf2   : > { %p1483_p3 = por %p1482_p12, %p1481_p10 }
 0xbf3   : > { %p1479_p8 = pneg %p1478_p0 }
 0xbf4   : > { %p1485_p1 = por %p1484_p9, %p1483_p3 }
 0xbf6   : > { %p1486_p2 = pnand %p1485_p1, %p1479_p8 }
 0xbf8   : > { %1489 = shalt.err (!%p1486_p2)
}
 0xbf9   : > { %1196 = dma.vmem_to_hbm [thread:$0]  (%p2212_p13), %s874_s1, 32, %s2028_s21, %s838_s19  }
 0xbfa PF: > { %s2213_s8 = sld [smem:[#allocation19_spill]]  ;;  %s2214_s28 = sld [smem:[#allocation23_spill]] }
 0xbfb   : > { %p1222_p4 = scmp.ge.s32.totalorder %s1592_s7, 2 }
 0xc00   : > { %s885_s29 = sand.u32 1, %s2213_s8   ;;  %p2215_p11 = scmp.ne.s32.totalorder %s2214_s28, 0 }
 0xc01   : > { %s886_s0 = scalar_lea.sflag [#allocation6], %s885_s29 }
 0xc02   : > { %p1211_p5 = pnand %p1222_p4, %p2215_p11 }
 0xc04   : > { %1543 = dma.done.wait (!%p1211_p5), %s886_s0, 128  }
 0xc05   : > { %1545 = vsyncadd (!%p1211_p5), %s886_s0, 4294967168  ;;  %s2216_s15 = sld [smem:[#allocation17_spill]]  ;;  %s2217_s13 = sld [smem:[#allocation25_spill]] }
 0xc0b   : > { %s894_s27 = sand.u32 1, %s2216_s15   ;;  %p2218_p7 = scmp.ne.s32.totalorder %s2217_s13, 0 }
 0xc0c   : > { %s895_s9 = scalar_lea.sflag [#allocation12], %s894_s27 }
 0xc0d   : > { %p1214_p6 = pnand %p1222_p4, %p2218_p7 }
 0xc0f   : > { %1547 = dma.done.wait (!%p1214_p6), %s895_s9, 32  }
 0xc10   : > { %1549 = vsyncadd (!%p1214_p6), %s895_s9, 4294967264  ;;  %s27_s7 = sadd.s32 1, %s1592_s7   ;;  %s2219_s21 = sld [smem:[#allocation18_spill]] }
 0xc11   : > { %p24_p13 = scmp.ge.s32.totalorder %s27_s7, 6   ;;  %s2220_s27 = sld [smem:[#allocation22_spill]] }
 0xc12   : > { %s2221_s29 = sld [smem:[#allocation26_spill]]  ;;  %s2222_s22 = smov %s1560_s23 }
 0xc13   : > { %s2223_s23 = smov %s1833_s17  ;;  %s2224_s24 = smov %s1568_s25 }
 0xc14   : > { %s2225_s25 = smov %s1572_s26  ;;  %s2226_s26 = smov %s1839_s2 }
 0xc15   : > { %s2227_s28 = smov %s1588_s30  ;;  %s2228_s30 = smov %s2234_s14 }
 0xc16   :  { %26 = sbr.rel (!%p24_p13) target bundleno = 20 (0x14), region = 130 }
 0xc1d   :  { %900 = vsyncpa [#allocation5], 1 }
 0xc1e   :  { %902 = vsyncpa [#allocation5 + $0x1], 1 }
 0xc1f   :  { %903 = vsyncpa [#allocation8], 1 }
 0xc20   :  { %904 = vsyncpa [#allocation6], 1 }
 0xc21   :  { %906 = vsyncpa [#allocation6 + $0x1], 1 }
 0xc22   :  { %907 = vsyncpa [#allocation12], 1 }
 0xc23   :  { %909 = vsyncpa [#allocation12 + $0x1], 1 }

</bundles_post_ra>
